<compile_context>
chip_gen: v7x
topology: tpu7x:2x2x1
jax: 0.10.0
libtpu: 0.0.40
codegen_flags: <defaults>
</compile_context>

<pallas_src>
import jax
import jax.numpy as jnp
from jax.experimental import pallas as pl
from jax.experimental.pallas import tpu as pltpu

M = 768            # self.M (encoder hidden size)
L = 128            # self.L (attention hidden size)
C = 3              # self.feature_channel
KSIZE = 3          # conv_l1 kernel size == stride
LOUT = M // KSIZE  # 256 (conv_l1 output length)
WBIG_N = 256       # lanes of the fused weight slab: [w1 (128) | wcls (2) | 0]

assert C * LOUT == M, "file-classifier packing assumes C * LOUT == M"
assert L + 2 <= WBIG_N


# -----------------------------------------------------------------------------
# kernel
# -----------------------------------------------------------------------------
def _mil_kernel(x_ref, wbig_ref, w2_ref, wfile_ref, convw_ref, bias_ref,
                out_ref):
    f32 = jnp.float32
    x = x_ref[0]                                   # (N, M), columns permuted
    n = x.shape[0]

    # --- unpack the bias slab (one (8,128) tile) ------------------------------
    b1 = bias_ref[0:1, :]                          # (1, L)   attention[0].bias
    b2 = bias_ref[1:2, 0:C]                        # (1, C)   attention[2].bias
    bcls_row = bias_ref[1:2, C:C + 2]              # (1, 2)   classifier bias (lane)
    bc1 = bias_ref[2:2 + C, 0:1]                   # (C, 1)   conv_l1.bias
    bc2 = bias_ref[2:2 + C, 1:2]                   # (C, 1)   conv_l2.bias
    bcls_col = bias_ref[2:4, 2:3]                  # (2, 1)   classifier bias (sublane)

    # --- fused matmul: attention hidden + per-function classifier ------------
    # wbig rows are permuted exactly like x's columns, so this equals x@[w1|wcls]
    fused = jnp.dot(x, wbig_ref[...], preferred_element_type=f32)   # (N, 256)
    h = jnp.tanh(fused[:, 0:L] + b1)                                # (N, L)
    pfn = jax.nn.sigmoid(fused[:, L:L + 2] + bcls_row)              # (N, 2)

    # --- attention logits + softmax over the instance axis -------------------
    logits = jnp.dot(h, w2_ref[...], preferred_element_type=f32) + b2   # (N, C)
    mx = jnp.max(logits, axis=0, keepdims=True)
    ex = jnp.exp(logits - mx)
    a = ex / jnp.sum(ex, axis=0, keepdims=True)                     # (N, C)

    # --- Z = A @ X in permuted-column order: one (C,N)x(N,M) matmul ----------
    # zt[:, k*LOUT + l] == Z[:, 3l + k]  (the conv_l1 taps are aligned slices)
    zt = jax.lax.dot_general(a, x, (((0,), (0,)), ((), ())),
                             preferred_element_type=f32)            # (C, M)

    # --- conv_l1 (k=3, stride=3) + ReLU ---------------------------------------
    z1 = jnp.zeros((C, LOUT), f32)
    for k in range(KSIZE):
        z1 = z1 + jnp.dot(convw_ref[k], zt[:, k * LOUT:(k + 1) * LOUT],
                          preferred_element_type=f32)               # (C, LOUT)
    z1 = jnp.maximum(z1 + bc1, 0.0)

    # --- conv_l2 (1x1) + ReLU --------------------------------------------------
    z2 = jnp.maximum(
        jnp.dot(convw_ref[KSIZE], z1, preferred_element_type=f32) + bc2,
        0.0)                                                        # (C, LOUT)

    # --- file classifier on Z3 = Z2.view(1, -1) --------------------------------
    # logit[j] = sum_{c,l} Z2[c,l] * Wcls[j, c*LOUT + l]  (elementwise + lane
    # reductions, no padded 1-row MXU pushes)
    prod = wfile_ref[...] * z2[None, :, :]                          # (2, C, LOUT)
    lf = jnp.sum(jnp.sum(prod, axis=-1), axis=-1, keepdims=True)    # (2, 1)
    pfile_col = jax.nn.sigmoid(lf + bcls_col)                       # (2, 1)

    # --- single lane-dense output slab -----------------------------------------
    # rows 0..N-1: [ A (C) | prob_functions (2) | 0 ]
    # rows N..N+1: [ prob_file (as a column)    | 0 ]
    out_ref[0] = jnp.zeros((n + 2, 128), f32)
    out_ref[0, 0:n, 0:C] = a
    out_ref[0, 0:n, C:C + 2] = pfn
    out_ref[0, n:n + 2, 0:1] = pfile_col


# -----------------------------------------------------------------------------
# wrapper
# -----------------------------------------------------------------------------
def mil_head(x, packed):
    """x: (B, N, M) pooled features for B bags.

    Returns (prob_file (B,1,2), A (B,C,N), prob_functions (B,N,2))."""
    w_big_perm, w2, wcls_file, conv_w, bias = packed
    B, N, Mx = x.shape
    assert Mx == M

    # column permutation (built once, XLA side): x_perm[b,n,k*LOUT+l] = x[b,n,3l+k]
    x_perm = jnp.transpose(x.reshape(B, N, LOUT, KSIZE),
                           (0, 1, 3, 2)).reshape(B, N, M)

    out = pl.pallas_call(
        _mil_kernel,
        out_shape=jax.ShapeDtypeStruct((B, N + 2, 128), jnp.float32),
        grid=(B,),
        in_specs=[
            pl.BlockSpec((1, N, M), lambda b: (b, 0, 0)),
            pl.BlockSpec((M, WBIG_N), lambda b: (0, 0)),
            pl.BlockSpec((L, C), lambda b: (0, 0)),
            pl.BlockSpec((2, C, LOUT), lambda b: (0, 0, 0)),
            pl.BlockSpec((KSIZE + 1, C, C), lambda b: (0, 0, 0)),
            pl.BlockSpec((8, 128), lambda b: (0, 0)),
        ],
        out_specs=pl.BlockSpec((1, N + 2, 128), lambda b: (b, 0, 0)),
        compiler_params=pltpu.CompilerParams(
            dimension_semantics=("parallel",)),
    )(x_perm, w_big_perm, w2, wcls_file, conv_w, bias)

    A = jnp.transpose(out[:, :N, 0:C], (0, 2, 1))                # (B, C, N)
    prob_functions = out[:, :N, C:C + 2]                          # (B, N, 2)
    prob_file = jnp.transpose(out[:, N:N + 2, 0:1], (0, 2, 1))    # (B, 1, 2)
    return prob_file, A, prob_functions


def model_forward(outputs, packed, functions_labels=None, file_label=None):
    """Mirrors Model.forward after the encoder/pooling step (single bag)."""
    pfile_b, A_b, pfn_b = mil_head(outputs[None], packed)
    prob_file = pfile_b[0]                  # (1, 2)
    A = A_b[0]                              # (C, N)
    prob_functions = pfn_b[0]               # (N, 2)
    if file_label is None:
        return prob_file, A
    file_label = file_label.astype(jnp.float32)
    functions_labels = functions_labels.astype(jnp.float32)
    loss_file = (jnp.log(prob_file[:, 0] + 1e-10) * file_label
                 + jnp.log((1.0 - prob_file)[:, 0] + 1e-10) * (1.0 - file_label))
    loss_functions = (jnp.log(prob_functions[:, 0] + 1e-10) * functions_labels
                      + jnp.log((1.0 - prob_functions)[:, 0] + 1e-10)
                      * (1.0 - functions_labels))
    loss = -(0.5 * loss_file + 0.5 * loss_functions.mean())
    return loss, prob_file, A


# -----------------------------------------------------------------------------
# parameters
# -----------------------------------------------------------------------------
def init_params(key):
    """Raw parameters (transposed-torch layout convention)."""
    ks = jax.random.split(key, 10)
    s = 0.02
    w1 = jax.random.normal(ks[0], (M, L), jnp.float32) * s          # attention[0].weight.T
    b1 = jax.random.normal(ks[1], (1, L), jnp.float32) * s
    w2 = jax.random.normal(ks[2], (L, C), jnp.float32) * s          # attention[2].weight.T
    b2 = jax.random.normal(ks[3], (1, C), jnp.float32) * s
    wc1 = jax.random.normal(ks[4], (C, C, KSIZE), jnp.float32) * s  # conv_l1.weight (out,in,k)
    bc1 = jax.random.normal(ks[5], (C, 1), jnp.float32) * s
    wc2 = jax.random.normal(ks[6], (C, C), jnp.float32) * s         # conv_l2.weight (out,in)
    bc2 = jax.random.normal(ks[7], (C, 1), jnp.float32) * s
    wcls = jax.random.normal(ks[8], (M, 2), jnp.float32) * s        # classifier[0].weight.T
    bcls = jax.random.normal(ks[9], (1, 2), jnp.float32) * s
    return (w1, b1, w2, b2, wc1, bc1, wc2, bc2, wcls, bcls)


def pack_params(w1, b1, w2, b2, wc1, bc1, wc2, bc2, wcls, bcls):
    """Pack the 10 raw tensors into 5 kernel inputs with lane-dense layouts."""
    # fused slab [w1 | wcls], then row-permute to match the permuted x columns:
    # row (k*LOUT + l) of the permuted slab == row (3l + k) of the original.
    w_big = jnp.zeros((M, WBIG_N), jnp.float32)
    w_big = w_big.at[:, 0:L].set(w1)
    w_big = w_big.at[:, L:L + 2].set(wcls)
    w_big_perm = jnp.transpose(w_big.reshape(LOUT, KSIZE, WBIG_N),
                               (1, 0, 2)).reshape(M, WBIG_N)

    wcls_file = jnp.transpose(wcls.reshape(C, LOUT, 2), (2, 0, 1))   # (2, C, LOUT)
    conv_w = jnp.concatenate(
        [jnp.transpose(wc1, (2, 0, 1)), wc2[None]], axis=0)          # (K+1, C, C)

    bias = jnp.zeros((8, 128), jnp.float32)
    bias = bias.at[0, :].set(b1.reshape(L))
    bias = bias.at[1, 0:C].set(b2.reshape(C))
    bias = bias.at[1, C:C + 2].set(bcls.reshape(2))
    bias = bias.at[2:2 + C, 0].set(bc1.reshape(C))
    bias = bias.at[2:2 + C, 1].set(bc2.reshape(C))
    bias = bias.at[2:4, 2].set(bcls.reshape(2))
    return (w_big_perm, w2, wcls_file, conv_w, bias)


# -----------------------------------------------------------------------------
# pure-JAX reference (mirrors the PyTorch graph) for a correctness check
# -----------------------------------------------------------------------------
def _reference(x, raw):
    w1, b1, w2, b2, wc1, bc1, wc2, bc2, wcls, bcls = raw
    hp = jax.lax.Precision.HIGHEST
    h = jnp.tanh(jnp.dot(x, w1, precision=hp) + b1)
    a = jax.nn.softmax(jnp.dot(h, w2, precision=hp) + b2, axis=0)    # (N, C)
    A = a.T                                                          # (C, N)
    Z = jnp.dot(A, x, precision=hp)                                  # (C, M)
    Zr = Z.reshape(C, LOUT, KSIZE)
    Z1 = jax.nn.relu(jnp.einsum('oik,ilk->ol', wc1, Zr, precision=hp) + bc1)
    Z2 = jax.nn.relu(jnp.einsum('oi,il->ol', wc2, Z1, precision=hp) + bc2)
    Z3 = Z2.reshape(1, -1)
    prob_file = jax.nn.sigmoid(jnp.dot(Z3, wcls, precision=hp) + bcls)
    prob_functions = jax.nn.sigmoid(jnp.dot(x, wcls, precision=hp) + bcls)
    return prob_file, A, prob_functions


# -----------------------------------------------------------------------------
if __name__ == "__main__":
    key = jax.random.PRNGKey(0)
    k_feat, k_param, k_lab, k_bags = jax.random.split(key, 4)

    N = 8      # functions (instances) per bag
    B = 4      # bags per batched call (parallel grid axis -> megacore)

    raw = init_params(k_param)
    packed = pack_params(*raw)

    # ---- single-bag path (mirrors Model.forward) -----------------------------
    outputs = jax.random.normal(k_feat, (N, M), jnp.float32)
    functions_labels = jax.random.bernoulli(k_lab, 0.5, (N,)).astype(jnp.int32)
    file_label = jnp.array([1], jnp.int32)

    prob_file, A = model_forward(outputs, packed)                    # inference
    loss, prob_file2, A2 = model_forward(outputs, packed,
                                         functions_labels=functions_labels,
                                         file_label=file_label)      # training

    # ---- batched multi-bag path (throughput / megacore) -----------------------
    bags = jax.random.normal(k_bags, (B, N, M), jnp.float32)
    pfile_b, A_b, pfn_b = mil_head(bags, packed)

    jax.block_until_ready((prob_file, A, loss, prob_file2, A2,
                           pfile_b, A_b, pfn_b))

    # ---- shape checks ----------------------------------------------------------
    assert prob_file.shape == (1, 2) and A.shape == (C, N) and loss.shape == (1,)
    assert pfile_b.shape == (B, 1, 2) and A_b.shape == (B, C, N)
    assert pfn_b.shape == (B, N, 2)

    # ---- numerical check vs the pure-JAX reference -----------------------------
    # (loose tolerance: kernel vs XLA matmul precision on the MXU differs a bit)
    max_err = 0.0
    for b in range(B):
        rpf, rA, rpfn = _reference(bags[b], raw)
        max_err = max(max_err,
                      float(jnp.max(jnp.abs(pfile_b[b] - rpf))),
                      float(jnp.max(jnp.abs(A_b[b] - rA))),
                      float(jnp.max(jnp.abs(pfn_b[b] - rpfn))))
    assert max_err < 2e-2, f"kernel/reference mismatch: {max_err}"

    print("KERNEL_OK")
</pallas_src>

<mosaic_0001>
module attributes {stable_mosaic.version = 11 : i64} {
  func.func @_mil_kernel(%arg0: i32, %arg1: memref<1x8x768xf32, #tpu.memory_space<vmem>>, %arg2: memref<768x256xf32, #tpu.memory_space<vmem>>, %arg3: memref<128x3xf32, #tpu.memory_space<vmem>>, %arg4: memref<2x3x256xf32, #tpu.memory_space<vmem>>, %arg5: memref<4x3x3xf32, #tpu.memory_space<vmem>>, %arg6: memref<8x128xf32, #tpu.memory_space<vmem>>, %arg7: memref<1x10x128xf32, #tpu.memory_space<vmem>>) attributes {dimension_semantics = [#tpu.dimension_semantics<parallel>], iteration_bounds = array<i64: 1>, scalar_prefetch = 0 : i64, scratch_operands = 0 : i64, tpu.core_type = #tpu.core_type<tc>, window_params = [{transform_indices = @transform_0, window_bounds = array<i64: 1, 8, 768>}, {pipeline_mode = #tpu.pipeline_mode<synchronous>, transform_indices = @transform_1, window_bounds = array<i64: 768, 256>}, {pipeline_mode = #tpu.pipeline_mode<synchronous>, transform_indices = @transform_2, window_bounds = array<i64: 128, 3>}, {pipeline_mode = #tpu.pipeline_mode<synchronous>, transform_indices = @transform_3, window_bounds = array<i64: 2, 3, 256>}, {pipeline_mode = #tpu.pipeline_mode<synchronous>, transform_indices = @transform_4, window_bounds = array<i64: 4, 3, 3>}, {pipeline_mode = #tpu.pipeline_mode<synchronous>, transform_indices = @transform_5, window_bounds = array<i64: 8, 128>}, {transform_indices = @transform_6, window_bounds = array<i64: 1, 10, 128>}]} {
    %c0 = arith.constant 0 : index
    %c0_0 = arith.constant 0 : index
    %c0_1 = arith.constant 0 : index
    %0 = vector.load %arg1[%c0, %c0_0, %c0_1] : memref<1x8x768xf32, #tpu.memory_space<vmem>>, vector<1x8x768xf32>
    %1 = vector.shape_cast %0 : vector<1x8x768xf32> to vector<8x768xf32>
    %c0_2 = arith.constant 0 : index
    %c0_3 = arith.constant 0 : index
    %2 = vector.load %arg6[%c0_2, %c0_3] : memref<8x128xf32, #tpu.memory_space<vmem>>, vector<1x128xf32>
    %c1 = arith.constant 1 : index
    %c0_4 = arith.constant 0 : index
    %3 = vector.load %arg6[%c1, %c0_4] : memref<8x128xf32, #tpu.memory_space<vmem>>, vector<1x3xf32>
    %c1_5 = arith.constant 1 : index
    %c3 = arith.constant 3 : index
    %4 = vector.load %arg6[%c1_5, %c3] : memref<8x128xf32, #tpu.memory_space<vmem>>, vector<1x2xf32>
    %c2 = arith.constant 2 : index
    %c0_6 = arith.constant 0 : index
    %5 = vector.load %arg6[%c2, %c0_6] : memref<8x128xf32, #tpu.memory_space<vmem>>, vector<3x1xf32>
    %c2_7 = arith.constant 2 : index
    %c1_8 = arith.constant 1 : index
    %6 = vector.load %arg6[%c2_7, %c1_8] : memref<8x128xf32, #tpu.memory_space<vmem>>, vector<3x1xf32>
    %c2_9 = arith.constant 2 : index
    %c2_10 = arith.constant 2 : index
    %7 = vector.load %arg6[%c2_9, %c2_10] : memref<8x128xf32, #tpu.memory_space<vmem>>, vector<2x1xf32>
    %c0_11 = arith.constant 0 : index
    %c0_12 = arith.constant 0 : index
    %8 = vector.load %arg2[%c0_11, %c0_12] : memref<768x256xf32, #tpu.memory_space<vmem>>, vector<768x256xf32>
    %cst = arith.constant dense<0.000000e+00> : vector<8x256xf32>
    %9 = tpu.matmul %1, %8, %cst {dimension_numbers = #tpu.dot_dimension_numbers<[1], [0], [0], [1], [0, 0, 1, 1], [], []>} : vector<8x768xf32>, vector<768x256xf32>, vector<8x256xf32> -> vector<8x256xf32>
    %10 = vector.extract_strided_slice %9 {offsets = [0, 0], sizes = [8, 128], strides = [1, 1]} : vector<8x256xf32> to vector<8x128xf32>
    %11 = vector.broadcast %2 : vector<1x128xf32> to vector<8x128xf32>
    %12 = arith.addf %10, %11 : vector<8x128xf32>
    %13 = math.tanh %12 : vector<8x128xf32>
    %14 = vector.extract_strided_slice %9 {offsets = [0, 128], sizes = [8, 2], strides = [1, 1]} : vector<8x256xf32> to vector<8x2xf32>
    %15 = vector.broadcast %4 : vector<1x2xf32> to vector<8x2xf32>
    %16 = arith.addf %14, %15 : vector<8x2xf32>
    %17 = arith.negf %16 : vector<8x2xf32>
    %18 = math.exp %17 : vector<8x2xf32>
    %cst_13 = arith.constant 1.000000e+00 : f32
    %19 = vector.broadcast %cst_13 : f32 to vector<8x2xf32>
    %20 = arith.addf %19, %18 : vector<8x2xf32>
    %21 = arith.divf %19, %20 : vector<8x2xf32>
    %c0_14 = arith.constant 0 : index
    %c0_15 = arith.constant 0 : index
    %22 = vector.load %arg3[%c0_14, %c0_15] : memref<128x3xf32, #tpu.memory_space<vmem>>, vector<128x3xf32>
    %cst_16 = arith.constant dense<0.000000e+00> : vector<8x3xf32>
    %23 = tpu.matmul %13, %22, %cst_16 {dimension_numbers = #tpu.dot_dimension_numbers<[1], [0], [0], [1], [0, 0, 1, 1], [], []>} : vector<8x128xf32>, vector<128x3xf32>, vector<8x3xf32> -> vector<8x3xf32>
    %24 = vector.broadcast %3 : vector<1x3xf32> to vector<8x3xf32>
    %25 = arith.addf %23, %24 : vector<8x3xf32>
    %cst_17 = arith.constant dense<0xFF800000> : vector<3xf32>
    %26 = vector.multi_reduction <maximumf>, %25, %cst_17 [0] : vector<8x3xf32> to vector<3xf32>
    %27 = vector.shape_cast %26 : vector<3xf32> to vector<1x3xf32>
    %28 = vector.broadcast %27 : vector<1x3xf32> to vector<8x3xf32>
    %29 = arith.subf %25, %28 : vector<8x3xf32>
    %30 = math.exp %29 : vector<8x3xf32>
    %cst_18 = arith.constant dense<0.000000e+00> : vector<3xf32>
    %31 = vector.multi_reduction <add>, %30, %cst_18 [0] : vector<8x3xf32> to vector<3xf32>
    %32 = vector.shape_cast %31 : vector<3xf32> to vector<1x3xf32>
    %33 = vector.broadcast %32 : vector<1x3xf32> to vector<8x3xf32>
    %34 = arith.divf %30, %33 : vector<8x3xf32>
    %cst_19 = arith.constant dense<0.000000e+00> : vector<3x768xf32>
    %35 = tpu.matmul %34, %1, %cst_19 {dimension_numbers = #tpu.dot_dimension_numbers<[0], [0], [1], [1], [0, 1, 1, 1], [], []>} : vector<8x3xf32>, vector<8x768xf32>, vector<3x768xf32> -> vector<3x768xf32>
    %cst_20 = arith.constant 0.000000e+00 : f32
    %36 = vector.broadcast %cst_20 : f32 to vector<3x256xf32>
    %c0_21 = arith.constant 0 : index
    %c0_22 = arith.constant 0 : index
    %c0_23 = arith.constant 0 : index
    %37 = vector.load %arg5[%c0_21, %c0_22, %c0_23] : memref<4x3x3xf32, #tpu.memory_space<vmem>>, vector<1x3x3xf32>
    %38 = vector.shape_cast %37 : vector<1x3x3xf32> to vector<3x3xf32>
    %39 = vector.extract_strided_slice %35 {offsets = [0, 0], sizes = [3, 256], strides = [1, 1]} : vector<3x768xf32> to vector<3x256xf32>
    %cst_24 = arith.constant dense<0.000000e+00> : vector<3x256xf32>
    %40 = tpu.matmul %38, %39, %cst_24 {dimension_numbers = #tpu.dot_dimension_numbers<[1], [0], [0], [1], [0, 0, 1, 1], [], []>} : vector<3x3xf32>, vector<3x256xf32>, vector<3x256xf32> -> vector<3x256xf32>
    %41 = arith.addf %36, %40 : vector<3x256xf32>
    %c1_25 = arith.constant 1 : index
    %c0_26 = arith.constant 0 : index
    %c0_27 = arith.constant 0 : index
    %42 = vector.load %arg5[%c1_25, %c0_26, %c0_27] : memref<4x3x3xf32, #tpu.memory_space<vmem>>, vector<1x3x3xf32>
    %43 = vector.shape_cast %42 : vector<1x3x3xf32> to vector<3x3xf32>
    %44 = vector.extract_strided_slice %35 {offsets = [0, 256], sizes = [3, 256], strides = [1, 1]} : vector<3x768xf32> to vector<3x256xf32>
    %cst_28 = arith.constant dense<0.000000e+00> : vector<3x256xf32>
    %45 = tpu.matmul %43, %44, %cst_28 {dimension_numbers = #tpu.dot_dimension_numbers<[1], [0], [0], [1], [0, 0, 1, 1], [], []>} : vector<3x3xf32>, vector<3x256xf32>, vector<3x256xf32> -> vector<3x256xf32>
    %46 = arith.addf %41, %45 : vector<3x256xf32>
    %c2_29 = arith.constant 2 : index
    %c0_30 = arith.constant 0 : index
    %c0_31 = arith.constant 0 : index
    %47 = vector.load %arg5[%c2_29, %c0_30, %c0_31] : memref<4x3x3xf32, #tpu.memory_space<vmem>>, vector<1x3x3xf32>
    %48 = vector.shape_cast %47 : vector<1x3x3xf32> to vector<3x3xf32>
    %49 = vector.extract_strided_slice %35 {offsets = [0, 512], sizes = [3, 256], strides = [1, 1]} : vector<3x768xf32> to vector<3x256xf32>
    %cst_32 = arith.constant dense<0.000000e+00> : vector<3x256xf32>
    %50 = tpu.matmul %48, %49, %cst_32 {dimension_numbers = #tpu.dot_dimension_numbers<[1], [0], [0], [1], [0, 0, 1, 1], [], []>} : vector<3x3xf32>, vector<3x256xf32>, vector<3x256xf32> -> vector<3x256xf32>
    %51 = arith.addf %46, %50 : vector<3x256xf32>
    %52 = vector.broadcast %5 : vector<3x1xf32> to vector<3x256xf32>
    %53 = arith.addf %51, %52 : vector<3x256xf32>
    %cst_33 = arith.constant 0.000000e+00 : f32
    %54 = vector.broadcast %cst_33 : f32 to vector<3x256xf32>
    %55 = arith.maximumf %53, %54 : vector<3x256xf32>
    %c3_34 = arith.constant 3 : index
    %c0_35 = arith.constant 0 : index
    %c0_36 = arith.constant 0 : index
    %56 = vector.load %arg5[%c3_34, %c0_35, %c0_36] : memref<4x3x3xf32, #tpu.memory_space<vmem>>, vector<1x3x3xf32>
    %57 = vector.shape_cast %56 : vector<1x3x3xf32> to vector<3x3xf32>
    %cst_37 = arith.constant dense<0.000000e+00> : vector<3x256xf32>
    %58 = tpu.matmul %57, %55, %cst_37 {dimension_numbers = #tpu.dot_dimension_numbers<[1], [0], [0], [1], [0, 0, 1, 1], [], []>} : vector<3x3xf32>, vector<3x256xf32>, vector<3x256xf32> -> vector<3x256xf32>
    %59 = vector.broadcast %6 : vector<3x1xf32> to vector<3x256xf32>
    %60 = arith.addf %58, %59 : vector<3x256xf32>
    %cst_38 = arith.constant 0.000000e+00 : f32
    %61 = vector.broadcast %cst_38 : f32 to vector<3x256xf32>
    %62 = arith.maximumf %60, %61 : vector<3x256xf32>
    %c0_39 = arith.constant 0 : index
    %c0_40 = arith.constant 0 : index
    %c0_41 = arith.constant 0 : index
    %63 = vector.load %arg4[%c0_39, %c0_40, %c0_41] : memref<2x3x256xf32, #tpu.memory_space<vmem>>, vector<2x3x256xf32>
    %64 = vector.shape_cast %62 : vector<3x256xf32> to vector<1x3x256xf32>
    %65 = vector.broadcast %64 : vector<1x3x256xf32> to vector<2x3x256xf32>
    %66 = arith.mulf %63, %65 : vector<2x3x256xf32>
    %cst_42 = arith.constant dense<0.000000e+00> : vector<2x3xf32>
    %67 = vector.multi_reduction <add>, %66, %cst_42 [2] : vector<2x3x256xf32> to vector<2x3xf32>
    %cst_43 = arith.constant dense<0.000000e+00> : vector<2xf32>
    %68 = vector.multi_reduction <add>, %67, %cst_43 [1] : vector<2x3xf32> to vector<2xf32>
    %69 = vector.shape_cast %68 : vector<2xf32> to vector<2x1xf32>
    %70 = arith.addf %69, %7 : vector<2x1xf32>
    %71 = arith.negf %70 : vector<2x1xf32>
    %72 = math.exp %71 : vector<2x1xf32>
    %cst_44 = arith.constant 1.000000e+00 : f32
    %73 = vector.broadcast %cst_44 : f32 to vector<2x1xf32>
    %74 = arith.addf %73, %72 : vector<2x1xf32>
    %75 = arith.divf %73, %74 : vector<2x1xf32>
    %cst_45 = arith.constant 0.000000e+00 : f32
    %76 = vector.broadcast %cst_45 : f32 to vector<10x128xf32>
    %c0_46 = arith.constant 0 : index
    %c0_47 = arith.constant 0 : index
    %c0_48 = arith.constant 0 : index
    %77 = vector.load %arg7[%c0_46, %c0_47, %c0_48] : memref<1x10x128xf32, #tpu.memory_space<vmem>>, vector<1x10x128xf32>
    %78 = vector.shape_cast %77 : vector<1x10x128xf32> to vector<10x128xf32>
    %79 = vector.shape_cast %76 : vector<10x128xf32> to vector<1x10x128xf32>
    tpu.vector_store %arg7[%c0_46, %c0_47, %c0_48], %79 {strides = array<i32>} : memref<1x10x128xf32, #tpu.memory_space<vmem>>, vector<1x10x128xf32>,
    %c0_49 = arith.constant 0 : index
    %c0_50 = arith.constant 0 : index
    %c0_51 = arith.constant 0 : index
    %80 = vector.load %arg7[%c0_49, %c0_50, %c0_51] : memref<1x10x128xf32, #tpu.memory_space<vmem>>, vector<1x8x3xf32>
    %81 = vector.shape_cast %80 : vector<1x8x3xf32> to vector<8x3xf32>
    %82 = vector.shape_cast %34 : vector<8x3xf32> to vector<1x8x3xf32>
    tpu.vector_store %arg7[%c0_49, %c0_50, %c0_51], %82 {strides = array<i32>} : memref<1x10x128xf32, #tpu.memory_space<vmem>>, vector<1x8x3xf32>,
    %c0_52 = arith.constant 0 : index
    %c0_53 = arith.constant 0 : index
    %c3_54 = arith.constant 3 : index
    %83 = vector.load %arg7[%c0_52, %c0_53, %c3_54] : memref<1x10x128xf32, #tpu.memory_space<vmem>>, vector<1x8x2xf32>
    %84 = vector.shape_cast %83 : vector<1x8x2xf32> to vector<8x2xf32>
    %85 = vector.shape_cast %21 : vector<8x2xf32> to vector<1x8x2xf32>
    tpu.vector_store %arg7[%c0_52, %c0_53, %c3_54], %85 {strides = array<i32>} : memref<1x10x128xf32, #tpu.memory_space<vmem>>, vector<1x8x2xf32>,
    %c0_55 = arith.constant 0 : index
    %c8 = arith.constant 8 : index
    %c0_56 = arith.constant 0 : index
    %86 = vector.load %arg7[%c0_55, %c8, %c0_56] : memref<1x10x128xf32, #tpu.memory_space<vmem>>, vector<1x2x1xf32>
    %87 = vector.shape_cast %86 : vector<1x2x1xf32> to vector<2x1xf32>
    %88 = vector.shape_cast %75 : vector<2x1xf32> to vector<1x2x1xf32>
    tpu.vector_store %arg7[%c0_55, %c8, %c0_56], %88 {strides = array<i32>} : memref<1x10x128xf32, #tpu.memory_space<vmem>>, vector<1x2x1xf32>,
    return
  }
  func.func @transform_0(%arg0: i32) -> (i32, i32, i32) {
    %c0_i32 = arith.constant 0 : i32
    %c0_i32_0 = arith.constant 0 : i32
    %c0_i32_1 = arith.constant 0 : i32
    return %arg0, %c0_i32, %c0_i32_0 : i32, i32, i32
  }
  func.func @transform_1(%arg0: i32) -> (i32, i32) {
    %c0_i32 = arith.constant 0 : i32
    %c0_i32_0 = arith.constant 0 : i32
    %c0_i32_1 = arith.constant 0 : i32
    return %c0_i32, %c0_i32_0 : i32, i32
  }
  func.func @transform_2(%arg0: i32) -> (i32, i32) {
    %c0_i32 = arith.constant 0 : i32
    %c0_i32_0 = arith.constant 0 : i32
    %c0_i32_1 = arith.constant 0 : i32
    return %c0_i32, %c0_i32_0 : i32, i32
  }
  func.func @transform_3(%arg0: i32) -> (i32, i32, i32) {
    %c0_i32 = arith.constant 0 : i32
    %c0_i32_0 = arith.constant 0 : i32
    %c0_i32_1 = arith.constant 0 : i32
    %c0_i32_2 = arith.constant 0 : i32
    return %c0_i32, %c0_i32_0, %c0_i32_1 : i32, i32, i32
  }
  func.func @transform_4(%arg0: i32) -> (i32, i32, i32) {
    %c0_i32 = arith.constant 0 : i32
    %c0_i32_0 = arith.constant 0 : i32
    %c0_i32_1 = arith.constant 0 : i32
    %c0_i32_2 = arith.constant 0 : i32
    return %c0_i32, %c0_i32_0, %c0_i32_1 : i32, i32, i32
  }
  func.func @transform_5(%arg0: i32) -> (i32, i32) {
    %c0_i32 = arith.constant 0 : i32
    %c0_i32_0 = arith.constant 0 : i32
    %c0_i32_1 = arith.constant 0 : i32
    return %c0_i32, %c0_i32_0 : i32, i32
  }
  func.func @transform_6(%arg0: i32) -> (i32, i32, i32) {
    %c0_i32 = arith.constant 0 : i32
    %c0_i32_0 = arith.constant 0 : i32
    %c0_i32_1 = arith.constant 0 : i32
    return %arg0, %c0_i32, %c0_i32_0 : i32, i32, i32
  }
}

</mosaic_0001>

<bundles_post_ra>
// kernel: tpu_custom_call.1
= control target key start
LH: loop header
LB: loop body
LE: loop exit
PB: predicated region body
PF: predicated region fallthrough
CT: control target
= control target key end

     0   :  { %11 = vsyncpa [#allocation3], 0  ;;  %s1593_s21 = smov [#allocation2]   ;;  %s1826_s0 = inlined_call_operand.vmem [shape: f32[1,8,768], index: 0, kind: input, shape index: {}]   ;;  %s1827_s1 = inlined_call_operand.hbm [shape: f32[768,256], index: 1, kind: input, shape index: {}]   ;;  %s1828_s2 = inlined_call_operand.vmem [shape: f32[128,3], index: 2, kind: input, shape index: {}]   ;;  %s1829_s3 = inlined_call_operand.vmem [shape: f32[2,3,256], index: 3, kind: input, shape index: {}]   ;;  %s1830_s4 = inlined_call_operand.vmem [shape: f32[4,3,3], index: 4, kind: input, shape index: {}]   ;;  %s1831_s5 = inlined_call_operand.vmem [shape: f32[8,128], index: 5, kind: input, shape index: {}]   ;;  %s1832_s6 = inlined_call_operand.vmem [shape: f32[1,10,128], index: 6, kind: output, shape index: {}]  }
   0x1   :  { %s19_s22 = sshll.u32 %s1593_s21, 4  ;;  %s1569_s25 = scalar_lea.hbm %s1827_s1, 24576  ;;  %s20_s22 = int_to_ptr.vmem [resolvable:$true] %s19_s22 }
   0x2   :  { %p1570_p0 = scmp.ne.s32.totalorder %s1827_s1, %s1569_s25  ;;  %p1573_p1 = scmp.lt.u32.totalorder %s1569_s25, %s1827_s1 }
   0x4   :  { %p1575_p2 = pnand %p1573_p1, %p1570_p0 }
   0x6   :  { %1578 = shalt.err (!%p1575_p2)
}
   0x7   :  { %s1579_s30 = scalar_lea.vmem %s20_s22, 24576  ;;  %p1584_p4 = scmp.lt.s32.totalorder %s20_s22, %s20_s22 }
   0x8   :  { %p1580_p3 = scmp.ne.s32.totalorder %s20_s22, %s1579_s30  ;;  %p1585_p5 = scmp.lt.s32.totalorder %s1579_s30, %s1579_s30 }
   0xa   :  { %p1586_p6 = por %p1585_p5, %p1584_p4 }
   0xc   :  { %p1587_p7 = pnand %p1586_p6, %p1580_p3 }
   0xe   :  { %1590 = shalt.err (!%p1587_p7)
}
   0xf   :  { %s1594_s7 = smov 256   ;;  %s1595_s8 = smov 16  }
  0x10   :  { %25 = dma.hbm_to_vmem [thread:$0]  %s1827_s1, 24576, %s20_s22, [#allocation3], %s1594_s7, %s1594_s7, %s1595_s8  }
  0x11   :  { %1591 = dma.done.wait [#allocation3], 24576  }
  0x12   :  { %1592 = vsyncadd [#allocation3], 4294942720  ;;  %v112_v0 = vld [vmem:[#allocation2 + $0x208] sm:$0xff]  ;;  %v114_v1 = vld [vmem:[#allocation2 + $0x218] sm:$0xff]  ;;  %vm1597_vm0 = vmmov 0   ;;  %vm559_vm1 = vcmask 23552  }
  0x13   :  { %v111_v2 = vld [vmem:[#allocation2 + $0x200] sm:$0xff]  ;;  %v1381_v3 = vpack.c.bf16 %v114_v1, %v112_v0  ;;  %v113_v4 = vld [vmem:[#allocation2 + $0x210] sm:$0xff]  ;;  %v116_v5 = vld [vmem:[#allocation2 + $0x228] sm:$0xff]  ;;  %s1600_s14 = smov 125   ;;  %vm611_vm2 = vcmask 64512   ;;  %vm834_vm3 = vcmask 1042432  }
  0x14   :  { %v118_v6 = vld [vmem:[#allocation2 + $0x238] sm:$0xff]  ;;  %v1383_v7 = vpack.c.bf16 %v113_v4, %v111_v2  ;;  %v115_v9 = vld [vmem:[#allocation2 + $0x220] sm:$0xff]  ;;  %v117_v10 = vld [vmem:[#allocation2 + $0x230] sm:$0xff]  ;;  %vm1209_vm4 = vcmask 1041409   ;;  %vm1212_vm5 = vcmask 17408   ;;  %vm1230_vm6 = vcmask 39960  }
  0x15   :  { %v1385_v8 = vpack.c.bf16 %v118_v6, %v116_v5  ;;  %v120_v11 = vld [vmem:[#allocation2 + $0x248] sm:$0xff]  ;;  %1382 = vmatprep.subr.bf16.mxu0 %v1381_v3  ;;  %v122_v12 = vld [vmem:[#allocation2 + $0x258] sm:$0xff]  ;;  %v1387_v13 = vpack.c.bf16 %v117_v10, %v115_v9  ;;  %v119_v15 = vld [vmem:[#allocation2 + $0x240] sm:$0xff]  ;;  %s1603_s29 = smov 126   ;;  %vm1236_vm7 = vcmask 1024  }
  0x16   :  { %1384 = vmatpush1.bf16.msra.mxu0 %v1383_v7  ;;  %v1389_v14 = vpack.c.bf16 %v122_v12, %v120_v11  ;;  %v121_v16 = vld [vmem:[#allocation2 + $0x250] sm:$0xff]  ;;  %v124_v17 = vld [vmem:[#allocation2 + $0x268] sm:$0xff]  ;;  %v126_v18 = vld [vmem:[#allocation2 + $0x278] sm:$0xff] }
  0x17   :  { %1386 = vmatprep.subr.bf16.mxu0 %v1385_v8  ;;  %v1391_v19 = vpack.c.bf16 %v121_v16, %v119_v15  ;;  %v1393_v20 = vpack.c.bf16 %v126_v18, %v124_v17  ;;  %v123_v21 = vld [vmem:[#allocation2 + $0x260] sm:$0xff]  ;;  %v125_v22 = vld [vmem:[#allocation2 + $0x270] sm:$0xff]  ;;  %v128_v23 = vld [vmem:[#allocation2 + $0x288] sm:$0xff] }
  0x18   :  { %v130_v24 = vld [vmem:[#allocation2 + $0x298] sm:$0xff]  ;;  %v1395_v25 = vpack.c.bf16 %v125_v22, %v123_v21  ;;  %v127_v27 = vld [vmem:[#allocation2 + $0x280] sm:$0xff]  ;;  %v129_v28 = vld [vmem:[#allocation2 + $0x290] sm:$0xff] }
  0x19   :  { %v1397_v26 = vpack.c.bf16 %v130_v24, %v128_v23  ;;  %v132_v29 = vld [vmem:[#allocation2 + $0x2a8] sm:$0xff]  ;;  %v134_v30 = vld [vmem:[#allocation2 + $0x2b8] sm:$0xff]  ;;  %v1399_v31 = vpack.c.bf16 %v129_v28, %v127_v27  ;;  %v131_v33 = vld [vmem:[#allocation2 + $0x2a0] sm:$0xff] }
  0x1a   :  { %1388 = vmatpush1.bf16.msra.mxu0 %v1387_v13  ;;  %v1401_v32 = vpack.c.bf16 %v134_v30, %v132_v29  ;;  %v133_v34 = vld [vmem:[#allocation2 + $0x2b0] sm:$0xff]  ;;  %v136_v35 = vld [vmem:[#allocation2 + $0x2c8] sm:$0xff]  ;;  %v138_v36 = vld [vmem:[#allocation2 + $0x2d8] sm:$0xff] }
  0x1b   :  { %1390 = vmatprep.subr.bf16.mxu0 %v1389_v14  ;;  %v1403_v37 = vpack.c.bf16 %v133_v34, %v131_v33  ;;  %v135_v38 = vld [vmem:[#allocation2 + $0x2c0] sm:$0xff]  ;;  %v137_v39 = vld [vmem:[#allocation2 + $0x2d0] sm:$0xff]  ;;  %v140_v40 = vld [vmem:[#allocation2 + $0x2e8] sm:$0xff]  ;;  %v1405_v41 = vpack.c.bf16 %v138_v36, %v136_v35 }
  0x1c   :  { %v142_v42 = vld [vmem:[#allocation2 + $0x2f8] sm:$0xff]  ;;  %v48_v43 = vld [vmem:[#allocation2 + $0x8] sm:$0xff]  ;;  %v47_v46 = vld [vmem:[#allocation2] sm:$0xff]  ;;  %v1407_v50 = vpack.c.bf16 %v137_v39, %v135_v38 }
  0x1d   :  { %v50_v44 = vld [vmem:[#allocation2 + $0x18] sm:$0xff]  ;;  %v49_v47 = vld [vmem:[#allocation2 + $0x10] sm:$0xff]  ;;  %v139_v51 = vld [vmem:[#allocation2 + $0x2e0] sm:$0xff]  ;;  %v1409_v54 = vpack.c.bf16 %v142_v42, %v140_v40 }
  0x1e   :  { %1392 = vmatpush1.bf16.msra.mxu0 %v1391_v19  ;;  %v1317_v45 = vpack.c.bf16 %v50_v44, %v48_v43  ;;  %v1654_v48 = vld [vmem:[%s1826_s0 + $0x18] sm:$0xff]  ;;  %v1319_v49 = vpack.c.bf16 %v49_v47, %v47_v46  ;;  %v141_v52 = vld [vmem:[#allocation2 + $0x2f0] sm:$0xff]  ;;  %v52_v53 = vld [vmem:[#allocation2 + $0x28] sm:$0xff] }
  0x1f   :  { %1394 = vmatprep.subr.bf16.mxu0 %v1393_v20  ;;  %374 = vmatprep.mubr.f32.mxu0 %v1654_v48  ;;  %v54_v55 = vld [vmem:[#allocation2 + $0x38] sm:$0xff]  ;;  %v51_v56 = vld [vmem:[#allocation2 + $0x20] sm:$0xff]  ;;  %v53_v57 = vld [vmem:[#allocation2 + $0x30] sm:$0xff]  ;;  %v1411_v0 = vpack.c.bf16 %v141_v52, %v139_v51 }
  0x20   :  { %1318 = vmatprep.subr.bf16.mxu1 %v1317_v45  ;;  %v144_v58 = vld [vmem:[#allocation2 + $0x308] sm:$0xff]  ;;  %v146_v59 = vld [vmem:[#allocation2 + $0x318] sm:$0xff]  ;;  %v1321_v60 = vpack.c.bf16 %v54_v55, %v52_v53  ;;  %v1323_v61 = vpack.c.bf16 %v53_v57, %v51_v56  ;;  %v143_v1 = vld [vmem:[#allocation2 + $0x300] sm:$0xff] }
  0x21   :  { %1320 = vmatpush1.bf16.msra.mxu1 %v1319_v49  ;;  %v56_v62 = vld [vmem:[#allocation2 + $0x48] sm:$0xff]  ;;  %v58_v63 = vld [vmem:[#allocation2 + $0x58] sm:$0xff]  ;;  %v55_v3 = vld [vmem:[#allocation2 + $0x40] sm:$0xff]  ;;  %v1413_v5 = vpack.c.bf16 %v146_v59, %v144_v58 }
  0x22   :  { %1396 = vmatpush1.bf16.msra.mxu0 %v1395_v25  ;;  %1322 = vmatprep.subr.bf16.mxu1 %v1321_v60  ;;  %v1325_v2 = vpack.c.bf16 %v58_v63, %v56_v62  ;;  %v57_v4 = vld [vmem:[#allocation2 + $0x50] sm:$0xff]  ;;  %v148_v7 = vld [vmem:[#allocation2 + $0x328] sm:$0xff]  ;;  %v150_v8 = vld [vmem:[#allocation2 + $0x338] sm:$0xff] }
  0x23   :  { %1398 = vmatprep.subr.bf16.mxu0 %v1397_v26  ;;  %v145_v6 = vld [vmem:[#allocation2 + $0x310] sm:$0xff]  ;;  %v1327_v9 = vpack.c.bf16 %v57_v4, %v55_v3  ;;  %v60_v10 = vld [vmem:[#allocation2 + $0x68] sm:$0xff]  ;;  %v62_v11 = vld [vmem:[#allocation2 + $0x78] sm:$0xff]  ;;  %v1417_v18 = vpack.c.bf16 %v150_v8, %v148_v7 }
  0x24   :  { %v59_v12 = vld [vmem:[#allocation2 + $0x60] sm:$0xff]  ;;  %v1329_v13 = vpack.c.bf16 %v62_v11, %v60_v10  ;;  %v61_v14 = vld [vmem:[#allocation2 + $0x70] sm:$0xff]  ;;  %v1415_v15 = vpack.c.bf16 %v145_v6, %v143_v1  ;;  %v64_v17 = vld [vmem:[#allocation2 + $0x88] sm:$0xff] }
  0x25   :  { %1324 = vmatpush1.bf16.msra.mxu1 %v1323_v61  ;;  %v147_v16 = vld [vmem:[#allocation2 + $0x320] sm:$0xff]  ;;  %v149_v19 = vld [vmem:[#allocation2 + $0x330] sm:$0xff]  ;;  %v152_v20 = vld [vmem:[#allocation2 + $0x348] sm:$0xff]  ;;  %v1331_v21 = vpack.c.bf16 %v61_v14, %v59_v12 }
  0x26   :  { %1400 = vmatpush1.bf16.msra.mxu0 %v1399_v31  ;;  %1326 = vmatprep.subr.bf16.mxu1 %v1325_v2  ;;  %v66_v22 = vld [vmem:[#allocation2 + $0x98] sm:$0xff]  ;;  %v63_v25 = vld [vmem:[#allocation2 + $0x80] sm:$0xff]  ;;  %v65_v26 = vld [vmem:[#allocation2 + $0x90] sm:$0xff]  ;;  %v1419_v29 = vpack.c.bf16 %v149_v19, %v147_v16 }
  0x27   :  { %1402 = vmatprep.subr.bf16.mxu0 %v1401_v32  ;;  %v154_v23 = vld [vmem:[#allocation2 + $0x358] sm:$0xff]  ;;  %v1333_v24 = vpack.c.bf16 %v66_v22, %v64_v17  ;;  %v68_v27 = vld [vmem:[#allocation2 + $0xa8] sm:$0xff]  ;;  %v151_v31 = vld [vmem:[#allocation2 + $0x340] sm:$0xff]  ;;  %v1335_v34 = vpack.c.bf16 %v65_v26, %v63_v25 }
  0x28   :  { %v70_v28 = vld [vmem:[#allocation2 + $0xb8] sm:$0xff]  ;;  %v1421_v30 = vpack.c.bf16 %v154_v23, %v152_v20  ;;  %v153_v32 = vld [vmem:[#allocation2 + $0x350] sm:$0xff]  ;;  %v156_v33 = vld [vmem:[#allocation2 + $0x368] sm:$0xff] }
  0x29   :  { %1328 = vmatpush1.bf16.msra.mxu1 %v1327_v9  ;;  %v158_v35 = vld [vmem:[#allocation2 + $0x378] sm:$0xff]  ;;  %v1337_v36 = vpack.c.bf16 %v70_v28, %v68_v27  ;;  %v69_v38 = vld [vmem:[#allocation2 + $0xb0] sm:$0xff]  ;;  %v72_v39 = vld [vmem:[#allocation2 + $0xc8] sm:$0xff] }
  0x2a   :  { %1404 = vmatpush1.bf16.msra.mxu0 %v1403_v37  ;;  %1330 = vmatprep.subr.bf16.mxu1 %v1329_v13  ;;  %v67_v37 = vld [vmem:[#allocation2 + $0xa0] sm:$0xff]  ;;  %v74_v40 = vld [vmem:[#allocation2 + $0xd8] sm:$0xff]  ;;  %v1425_v42 = vpack.c.bf16 %v158_v35, %v156_v33  ;;  %v157_v44 = vld [vmem:[#allocation2 + $0x370] sm:$0xff] }
  0x2b   :  { %1406 = vmatprep.subr.bf16.mxu0 %v1405_v41  ;;  %v1423_v41 = vpack.c.bf16 %v153_v32, %v151_v31  ;;  %v155_v43 = vld [vmem:[#allocation2 + $0x360] sm:$0xff]  ;;  %v160_v45 = vld [vmem:[#allocation2 + $0x388] sm:$0xff]  ;;  %v1339_v46 = vpack.c.bf16 %v69_v38, %v67_v37  ;;  %v162_v47 = vld [vmem:[#allocation2 + $0x398] sm:$0xff]  ;;  %v1341_v49 = vpack.c.bf16 %v74_v40, %v72_v39 }
  0x2c   :  { %v73_v51 = vld [vmem:[#allocation2 + $0xd0] sm:$0xff]  ;;  %v76_v52 = vld [vmem:[#allocation2 + $0xe8] sm:$0xff]  ;;  %v78_v53 = vld [vmem:[#allocation2 + $0xf8] sm:$0xff]  ;;  %v1429_v55 = vpack.c.bf16 %v162_v47, %v160_v45 }
  0x2d   :  { %1332 = vmatpush1.bf16.msra.mxu1 %v1331_v21  ;;  %v159_v56 = vld [vmem:[#allocation2 + $0x380] sm:$0xff]  ;;  %v161_v57 = vld [vmem:[#allocation2 + $0x390] sm:$0xff]  ;;  %v164_v58 = vld [vmem:[#allocation2 + $0x3a8] sm:$0xff]  ;;  %v1345_v61 = vpack.c.bf16 %v78_v53, %v76_v52 }
  0x2e   :  { %1408 = vmatpush1.bf16.msra.mxu0 %v1407_v50  ;;  %1334 = vmatprep.subr.bf16.mxu1 %v1333_v24  ;;  %v71_v50 = vld [vmem:[#allocation2 + $0xc0] sm:$0xff]  ;;  %v166_v60 = vld [vmem:[#allocation2 + $0x3b8] sm:$0xff]  ;;  %v77_v63 = vld [vmem:[#allocation2 + $0xf0] sm:$0xff]  ;;  %v1431_v2 = vpack.c.bf16 %v161_v57, %v159_v56 }
  0x2f   :  { %1410 = vmatprep.subr.bf16.mxu0 %v1409_v54  ;;  %v1427_v54 = vpack.c.bf16 %v157_v44, %v155_v43  ;;  %v1343_v59 = vpack.c.bf16 %v73_v51, %v71_v50  ;;  %v75_v62 = vld [vmem:[#allocation2 + $0xe0] sm:$0xff]  ;;  %v82_v1 = vld [vmem:[#allocation2 + $0x118] sm:$0xff]  ;;  %v1433_v3 = vpack.c.bf16 %v166_v60, %v164_v58  ;;  %v168_v6 = vld [vmem:[#allocation2 + $0x3c8] sm:$0xff] }
  0x30   :  { %v163_v4 = vld [vmem:[#allocation2 + $0x3a0] sm:$0xff]  ;;  %v1347_v7 = vpack.c.bf16 %v77_v63, %v75_v62  ;;  %v170_v8 = vld [vmem:[#allocation2 + $0x3d8] sm:$0xff]  ;;  %v81_v11 = vld [vmem:[#allocation2 + $0x110] sm:$0xff] }
  0x31   :  { %1336 = vmatpush1.bf16.msra.mxu1 %v1335_v34  ;;  %v79_v10 = vld [vmem:[#allocation2 + $0x100] sm:$0xff]  ;;  %v84_v12 = vld [vmem:[#allocation2 + $0x128] sm:$0xff]  ;;  %v86_v13 = vld [vmem:[#allocation2 + $0x138] sm:$0xff] }
  0x32   :  { %1412 = vmatpush1.bf16.msra.mxu0 %v1411_v0  ;;  %1338 = vmatprep.subr.bf16.mxu1 %v1337_v36  ;;  %v80_v0 = vld [vmem:[#allocation2 + $0x108] sm:$0xff]  ;;  %v167_v16 = vld [vmem:[#allocation2 + $0x3c0] sm:$0xff]  ;;  %v169_v17 = vld [vmem:[#allocation2 + $0x3d0] sm:$0xff]  ;;  %v1351_v19 = vpack.c.bf16 %v81_v11, %v79_v10  ;;  %v1353_v21 = vpack.c.bf16 %v86_v13, %v84_v12 }
  0x33   :  { %1414 = vmatprep.subr.bf16.mxu0 %v1413_v5  ;;  %v165_v5 = vld [vmem:[#allocation2 + $0x3b0] sm:$0xff]  ;;  %v1349_v9 = vpack.c.bf16 %v82_v1, %v80_v0  ;;  %v174_v20 = vld [vmem:[#allocation2 + $0x3f8] sm:$0xff]  ;;  %v83_v22 = vld [vmem:[#allocation2 + $0x120] sm:$0xff]  ;;  %v1439_v26 = vpack.c.bf16 %v169_v17, %v167_v16 }
  0x34   :  { %v1435_v14 = vpack.c.bf16 %v165_v5, %v163_v4  ;;  %v85_v23 = vld [vmem:[#allocation2 + $0x130] sm:$0xff]  ;;  %v88_v24 = vld [vmem:[#allocation2 + $0x148] sm:$0xff]  ;;  %v90_v25 = vld [vmem:[#allocation2 + $0x158] sm:$0xff] }
  0x35   :  { %1340 = vmatpush1.bf16.msra.mxu1 %v1339_v46  ;;  %v171_v28 = vld [vmem:[#allocation2 + $0x3e0] sm:$0xff]  ;;  %v1355_v31 = vpack.c.bf16 %v85_v23, %v83_v22  ;;  %v178_v32 = vld [vmem:[#allocation2 + $0x418] sm:$0xff]  ;;  %v1357_v33 = vpack.c.bf16 %v90_v25, %v88_v24  ;;  %v89_v35 = vld [vmem:[#allocation2 + $0x150] sm:$0xff] }
  0x36   :  { %1416 = vmatpush1.bf16.msra.mxu0 %v1415_v15  ;;  %1342 = vmatprep.subr.bf16.mxu1 %v1341_v49  ;;  %v1437_v15 = vpack.c.bf16 %v170_v8, %v168_v6  ;;  %v87_v34 = vld [vmem:[#allocation2 + $0x140] sm:$0xff]  ;;  %v92_v36 = vld [vmem:[#allocation2 + $0x168] sm:$0xff]  ;;  %v94_v37 = vld [vmem:[#allocation2 + $0x178] sm:$0xff] }
  0x37   :  { %1418 = vmatprep.subr.bf16.mxu0 %v1417_v18  ;;  %v172_v18 = vld [vmem:[#allocation2 + $0x3e8] sm:$0xff]  ;;  %v175_v40 = vld [vmem:[#allocation2 + $0x400] sm:$0xff]  ;;  %v1359_v43 = vpack.c.bf16 %v89_v35, %v87_v34  ;;  %v182_v44 = vld [vmem:[#allocation2 + $0x438] sm:$0xff]  ;;  %v1361_v45 = vpack.c.bf16 %v94_v37, %v92_v36 }
  0x38   :  { %v1441_v27 = vpack.c.bf16 %v174_v20, %v172_v18  ;;  %v91_v46 = vld [vmem:[#allocation2 + $0x160] sm:$0xff]  ;;  %v93_v47 = vld [vmem:[#allocation2 + $0x170] sm:$0xff]  ;;  %v96_v49 = vld [vmem:[#allocation2 + $0x188] sm:$0xff] }
  0x39   :  { %1344 = vmatpush1.bf16.msra.mxu1 %v1343_v59  ;;  %v98_v50 = vld [vmem:[#allocation2 + $0x198] sm:$0xff]  ;;  %v1660_v51 = vld [vmem:[%s1826_s0 + $0x10] sm:$0xff]  ;;  %v179_v53 = vld [vmem:[#allocation2 + $0x420] sm:$0xff]  ;;  %v1363_v58 = vpack.c.bf16 %v93_v47, %v91_v46 }
  0x3a   :  { %1420 = vmatpush1.bf16.msra.mxu0 %v1419_v29  ;;  %1346 = vmatprep.subr.bf16.mxu1 %v1345_v61  ;;  %v173_v29 = vld [vmem:[#allocation2 + $0x3f0] sm:$0xff]  ;;  %v184_v57 = vld [vmem:[#allocation2 + $0x448] sm:$0xff]  ;;  %v186_v60 = vld [vmem:[#allocation2 + $0x458] sm:$0xff]  ;;  %v1365_v61 = vpack.c.bf16 %v98_v50, %v96_v49 }
  0x3b   :  { %1422 = vmatprep.subr.bf16.mxu0 %v1421_v30  ;;  %v176_v30 = vld [vmem:[#allocation2 + $0x408] sm:$0xff]  ;;  %v1443_v38 = vpack.c.bf16 %v173_v29, %v171_v28  ;;  %v181_v56 = vld [vmem:[#allocation2 + $0x430] sm:$0xff]  ;;  %v95_v62 = vld [vmem:[#allocation2 + $0x180] sm:$0xff] }
  0x3c   :  { %v1445_v39 = vpack.c.bf16 %v178_v32, %v176_v30  ;;  %v1670_v59 = vld [vmem:[%s1826_s0 + $0x28] sm:$0xff]  ;;  %v97_v63 = vld [vmem:[#allocation2 + $0x190] sm:$0xff]  ;;  %v102_v1 = vld [vmem:[#allocation2 + $0x1b8] sm:$0xff] }
  0x3d   :  { %1348 = vmatpush1.bf16.msra.mxu1 %v1347_v7  ;;  %v100_v0 = vld [vmem:[#allocation2 + $0x1a8] sm:$0xff]  ;;  %v183_v4 = vld [vmem:[#allocation2 + $0x440] sm:$0xff]  ;;  %v185_v5 = vld [vmem:[#allocation2 + $0x450] sm:$0xff]  ;;  %v1367_v7 = vpack.c.bf16 %v97_v63, %v95_v62 }
  0x3e   :  { %1424 = vmatpush1.bf16.msra.mxu0 %v1423_v41  ;;  %1350 = vmatprep.subr.bf16.mxu1 %v1349_v9  ;;  %v177_v41 = vld [vmem:[#allocation2 + $0x410] sm:$0xff]  ;;  %v188_v6 = vld [vmem:[#allocation2 + $0x468] sm:$0xff]  ;;  %v190_v8 = vld [vmem:[#allocation2 + $0x478] sm:$0xff]  ;;  %v1369_v9 = vpack.c.bf16 %v102_v1, %v100_v0 }
  0x3f   :  { %1426 = vmatprep.subr.bf16.mxu0 %v1425_v42  ;;  %v180_v42 = vld [vmem:[#allocation2 + $0x428] sm:$0xff]  ;;  %v1447_v52 = vpack.c.bf16 %v177_v41, %v175_v40  ;;  %v99_v10 = vld [vmem:[#allocation2 + $0x1a0] sm:$0xff]  ;;  %v101_v11 = vld [vmem:[#allocation2 + $0x1b0] sm:$0xff] }
  0x40   :  { %v104_v12 = vld [vmem:[#allocation2 + $0x1c8] sm:$0xff]  ;;  %v106_v13 = vld [vmem:[#allocation2 + $0x1d8] sm:$0xff]  ;;  %v187_v16 = vld [vmem:[#allocation2 + $0x460] sm:$0xff] }
  0x41   :  { %1352 = vmatpush1.bf16.msra.mxu1 %v1351_v19  ;;  %v189_v17 = vld [vmem:[#allocation2 + $0x470] sm:$0xff]  ;;  %v192_v18 = vld [vmem:[#allocation2 + $0x488] sm:$0xff]  ;;  %v1371_v19 = vpack.c.bf16 %v101_v11, %v99_v10  ;;  %v194_v20 = vld [vmem:[#allocation2 + $0x498] sm:$0xff] }
  0x42   :  { %1428 = vmatpush1.bf16.msra.mxu0 %v1427_v54  ;;  %1354 = vmatprep.subr.bf16.mxu1 %v1353_v21  ;;  %v1665_v54 = vld [vmem:[%s1826_s0 + $0x8] sm:$0xff]  ;;  %v1373_v21 = vpack.c.bf16 %v106_v13, %v104_v12  ;;  %v103_v22 = vld [vmem:[#allocation2 + $0x1c0] sm:$0xff]  ;;  %v105_v23 = vld [vmem:[#allocation2 + $0x1d0] sm:$0xff] }
  0x43   :  { %1430 = vmatprep.subr.bf16.mxu0 %v1429_v55  ;;  %v1449_v55 = vpack.c.bf16 %v182_v44, %v180_v42  ;;  %303 = vmatprep.mubr.f32.mxu1 %v1665_v54  ;;  %v108_v24 = vld [vmem:[#allocation2 + $0x1e8] sm:$0xff]  ;;  %v110_v25 = vld [vmem:[#allocation2 + $0x1f8] sm:$0xff]  ;;  %v191_v28 = vld [vmem:[#allocation2 + $0x480] sm:$0xff] }
  0x44   :  { %v193_v29 = vld [vmem:[#allocation2 + $0x490] sm:$0xff]  ;;  %v196_v30 = vld [vmem:[#allocation2 + $0x4a8] sm:$0xff]  ;;  %v198_v32 = vld [vmem:[#allocation2 + $0x4b8] sm:$0xff] }
  0x45   :  { %1356 = vmatpush1.bf16.msra.mxu1 %v1355_v31  ;;  %v1375_v31 = vpack.c.bf16 %v105_v23, %v103_v22  ;;  %v107_v34 = vld [vmem:[#allocation2 + $0x1e0] sm:$0xff]  ;;  %v109_v35 = vld [vmem:[#allocation2 + $0x1f0] sm:$0xff]  ;;  %v1463_v36 = vpack.c.bf16 %v193_v29, %v191_v28  ;;  %v1465_v37 = vpack.c.bf16 %v198_v32, %v196_v30  ;;  %v200_v40 = vld [vmem:[#allocation2 + $0x4c8] sm:$0xff] }
  0x46   :  { %1432 = vmatpush1.bf16.msra.mxu0 %v1431_v2  ;;  %1358 = vmatprep.subr.bf16.mxu1 %v1357_v33  ;;  %v1451_v2 = vpack.c.bf16 %v181_v56, %v179_v53  ;;  %v1377_v33 = vpack.c.bf16 %v110_v25, %v108_v24  ;;  %v1379_v41 = vpack.c.bf16 %v109_v35, %v107_v34  ;;  %v202_v42 = vld [vmem:[#allocation2 + $0x4d8] sm:$0xff]  ;;  %v474_v44 = vld [vmem:[%s1828_s2 + $0x8] sm:$0xff]  ;;  %v199_v46 = vld [vmem:[#allocation2 + $0x4c0] sm:$0xff]  ;;  %v1596_v56 = vmov 0.0|0.0  }
  0x47   :  { %1434 = vmatprep.subr.bf16.mxu0 %v1433_v3  ;;  %v1453_v3 = vpack.c.bf16 %v186_v60, %v184_v57  ;;  %v1469_v47 = vpack.c.bf16 %v202_v42, %v200_v40  ;;  %v201_v49 = vld [vmem:[#allocation2 + $0x4d0] sm:$0xff]  ;;  %v204_v50 = vld [vmem:[#allocation2 + $0x4e8] sm:$0xff]  ;;  %v203_v62 = vld [vmem:[#allocation2 + $0x4e0] sm:$0xff] }
  0x48   :  { %v475_v57 = vld [vmem:[%s1828_s2 + $0x10] sm:$0xff]  ;;  %v1471_v60 = vpack.c.bf16 %v201_v49, %v199_v46  ;;  %v208_v0 = vld [vmem:[#allocation2 + $0x508] sm:$0xff]  ;;  %v214_v11 = vld [vmem:[#allocation2 + $0x538] sm:$0xff] }
  0x49   :  { %1360 = vmatpush1.bf16.msra.mxu1 %v1359_v43  ;;  %v473_v43 = vld [vmem:[%s1828_s2] sm:$0xff]  ;;  %v205_v63 = vld [vmem:[#allocation2 + $0x4f0] sm:$0xff]  ;;  %v480_v13 = vld [vmem:[%s1828_s2 + $0x38] sm:$0xff] }
  0x4a   :  { %1436 = vmatpush1.bf16.msra.mxu0 %v1435_v14  ;;  %1362 = vmatprep.subr.bf16.mxu1 %v1361_v45  ;;  %v1455_v14 = vpack.c.bf16 %v185_v5, %v183_v4  ;;  %v1510_v53 = vpack.c.bf16 %v474_v44, %v473_v43  ;;  %v478_v4 = vld [vmem:[%s1828_s2 + $0x28] sm:$0xff]  ;;  %v1475_v5 = vpack.c.bf16 %v205_v63, %v203_v62  ;;  %v479_v12 = vld [vmem:[%s1828_s2 + $0x30] sm:$0xff]  ;;  %v215_v23 = vld [vmem:[#allocation2 + $0x540] sm:$0xff] }
  0x4b   :  { %1438 = vmatprep.subr.bf16.mxu0 %v1437_v15  ;;  %v1457_v15 = vpack.c.bf16 %v190_v8, %v188_v6  ;;  %v209_v8 = vld [vmem:[#allocation2 + $0x510] sm:$0xff]  ;;  %v220_v25 = vld [vmem:[#allocation2 + $0x568] sm:$0xff]  ;;  %v219_v29 = vld [vmem:[#allocation2 + $0x560] sm:$0xff] }
  0x4c   :  { %v217_v24 = vld [vmem:[#allocation2 + $0x550] sm:$0xff]  ;;  %v226_v32 = vld [vmem:[#allocation2 + $0x598] sm:$0xff]  ;;  %v223_v35 = vld [vmem:[#allocation2 + $0x580] sm:$0xff] }
  0x4d   :  { %1364 = vmatpush1.bf16.msra.mxu1 %v1363_v58  ;;  %v476_v58 = vld [vmem:[%s1828_s2 + $0x18] sm:$0xff]  ;;  %v221_v30 = vld [vmem:[#allocation2 + $0x570] sm:$0xff]  ;;  %v232_v43 = vld [vmem:[#allocation2 + $0x5c8] sm:$0xff] }
  0x4e   :  { %1440 = vmatpush1.bf16.msra.mxu0 %v1439_v26  ;;  %1366 = vmatprep.subr.bf16.mxu1 %v1365_v61  ;;  %v1459_v26 = vpack.c.bf16 %v189_v17, %v187_v16  ;;  %v1513_v1 = vpack.c.bf16 %v476_v58, %v475_v57  ;;  %v211_v16 = vld [vmem:[#allocation2 + $0x520] sm:$0xff]  ;;  %v213_v17 = vld [vmem:[#allocation2 + $0x530] sm:$0xff]  ;;  %v234_v44 = vld [vmem:[#allocation2 + $0x5d8] sm:$0xff] }
  0x4f   :  { %1442 = vmatprep.subr.bf16.mxu0 %v1441_v27  ;;  %v1461_v27 = vpack.c.bf16 %v194_v20, %v192_v18  ;;  %v1519_v18 = vpack.c.bf16 %v480_v13, %v479_v12  ;;  %v218_v20 = vld [vmem:[#allocation2 + $0x558] sm:$0xff]  ;;  %v229_v42 = vld [vmem:[#allocation2 + $0x5b0] sm:$0xff]  ;;  %v1501_v46 = vpack.c.bf16 %v234_v44, %v232_v43  ;;  %v235_v58 = vld [vmem:[#allocation2 + $0x5e0] sm:$0xff] }
  0x50   :  { %v233_v49 = vld [vmem:[#allocation2 + $0x5d0] sm:$0xff]  ;;  %v1713_v62 = vld [vmem:[%s1826_s0 + $0x20] sm:$0xff] }
  0x51   :  { %1368 = vmatpush1.bf16.msra.mxu1 %v1367_v7  ;;  %v207_v7 = vld [vmem:[#allocation2 + $0x500] sm:$0xff] }
  0x52   :  { %1444 = vmatpush1.bf16.msra.mxu0 %v1443_v38  ;;  %1370 = vmatprep.subr.bf16.mxu1 %v1369_v9  ;;  %v195_v38 = vld [vmem:[#allocation2 + $0x4a0] sm:$0xff]  ;;  %v212_v9 = vld [vmem:[#allocation2 + $0x528] sm:$0xff] }
  0x53   :  { %1446 = vmatprep.subr.bf16.mxu0 %v1445_v39  ;;  %v197_v39 = vld [vmem:[#allocation2 + $0x4b0] sm:$0xff]  ;;  %v481_v63 = vld [vmem:[%s1828_s2 + $0x40] sm:$0xff] }
  0x54   :  { %v1467_v45 = vpack.c.bf16 %v197_v39, %v195_v38  ;;  %v230_v38 = vld [vmem:[#allocation2 + $0x5b8] sm:$0xff] }
  0x55   :  { %375 = vmatmul.mubr.f32.vlgmr.msra.gmra.mrb[0].mxu0 %v1660_v51  ;;  %1372 = vmatpush1.bf16.msra.mxu1 %v1371_v19  ;;  %v216_v19 = vld [vmem:[#allocation2 + $0x548] sm:$0xff] }
  0x56   :  { %1448 = vmatpush1.bf16.msra.mxu0 %v1447_v52  ;;  %445 = vmatprep.mubr.f32.mxu0 %v1670_v59  ;;  %v1684_v52 = vld [vmem:[%s1826_s0] sm:$0xff]  ;;  %v1485_v22 = vpack.c.bf16 %v218_v20, %v216_v19 }
  0x57   :  { %1450 = vmatprep.subr.bf16.mxu0 %v1449_v55  ;;  %1374 = vmatprep.subr.bf16.mxu1 %v1373_v21  ;;  %v206_v55 = vld [vmem:[#allocation2 + $0x4f8] sm:$0xff]  ;;  %v1483_v21 = vpack.c.bf16 %v213_v17, %v211_v16 }
  0x58   :  { %v1473_v61 = vpack.c.bf16 %v206_v55, %v204_v50  ;;  %v236_v50 = vld [vmem:[#allocation2 + $0x5e8] sm:$0xff] }
  0x59   :  { %1376 = vmatpush1.bf16.msra.mxu1 %v1375_v31  ;;  %v224_v31 = vld [vmem:[#allocation2 + $0x588] sm:$0xff] }
  0x5a   :  { %1452 = vmatpush1.bf16.msra.mxu0 %v1451_v2  ;;  %1378 = vmatprep.subr.bf16.mxu1 %v1377_v33  ;;  %v210_v2 = vld [vmem:[#allocation2 + $0x518] sm:$0xff]  ;;  %v1491_v33 = vpack.c.bf16 %v221_v30, %v219_v29  ;;  %v1493_v34 = vpack.c.bf16 %v226_v32, %v224_v31 }
  0x5b   :  { %1454 = vmatprep.subr.bf16.mxu0 %v1453_v3  ;;  %v477_v3 = vld [vmem:[%s1828_s2 + $0x20] sm:$0xff]  ;;  %v1477_v6 = vpack.c.bf16 %v210_v2, %v208_v0  ;;  %v482_v0 = vld [vmem:[%s1828_s2 + $0x48] sm:$0xff]  ;;  %v483_v2 = vld [vmem:[%s1828_s2 + $0x50] sm:$0xff] }
  0x5c   :  { %v1516_v10 = vpack.c.bf16 %v478_v4, %v477_v3  ;;  %v484_v3 = vld [vmem:[%s1828_s2 + $0x58] sm:$0xff] }
  0x5d   :  { %1380 = vmatpush1.bf16.msra.mxu1 %v1379_v41  ;;  %v227_v41 = vld [vmem:[#allocation2 + $0x5a0] sm:$0xff]  ;;  %v1525_v4 = vpack.c.bf16 %v484_v3, %v483_v2 }
  0x5e   :  { %1456 = vmatpush1.bf16.msra.mxu0 %v1455_v14  ;;  %1509 = vmatprep.subr.bf16.mxu1 %v1596_v56  ;;  %v1479_v14 = vpack.c.bf16 %v209_v8, %v207_v7  ;;  %v487_v8 = vld [vmem:[%s1828_s2 + $0x70] sm:$0xff] }
  0x5f   :  { %1458 = vmatprep.subr.bf16.mxu0 %v1457_v15  ;;  %v1481_v15 = vpack.c.bf16 %v214_v11, %v212_v9  ;;  %v488_v9 = vld [vmem:[%s1828_s2 + $0x78] sm:$0xff] }
  0x60   :  { %304 = vmatmul.mubr.f32.vlgmr.msra.gmra.mrb[0].mxu1 %v1684_v52  ;;  %v1531_v11 = vpack.c.bf16 %v488_v9, %v487_v8  ;;  %v1173_v8 = vld [vmem:[%s1829_s3] sm:$0x77]  ;;  %v1174_v9 = vld [vmem:[%s1829_s3 + $0x8] sm:$0x77]  ;;  %s1602_s3 = smov 3  }
  0x61   :  { %1511 = vmatpush3.bf16.msra.mxu1 %v1510_v53  ;;  %v238_v53 = vld [vmem:[#allocation2 + $0x5f8] sm:$0xff] }
  0x62   :  { %1460 = vmatpush1.bf16.msra.mxu0 %v1459_v26  ;;  %1512 = vmatprep.subr.bf16.mxu1 %v1596_v56  ;;  %v222_v26 = vld [vmem:[#allocation2 + $0x578] sm:$0xff]  ;;  %v1505_v57 = vpack.c.bf16 %v238_v53, %v236_v50  ;;  %v1256_v50 = vld [vmem:[%s1830_s4 + $0x8] sm:$0x7]  ;;  %v1601_v53 = vmov 1  }
  0x63   :  { %1462 = vmatprep.subr.bf16.mxu0 %v1461_v27  ;;  %v1487_v27 = vpack.c.bf16 %v217_v24, %v215_v23  ;;  %v1489_v28 = vpack.c.bf16 %v222_v26, %v220_v25  ;;  %1553 = vset.pattern.permute.xlu1 %v1601_v53 }
  0x65   :  { %1514 = vmatpush3.bf16.msra.mxu1 %v1513_v1  ;;  %v1522_v1 = vpack.c.bf16 %v482_v0, %v481_v63  ;;  %v1260_v0 = vld [vmem:[%s1830_s4 + $0xc] sm:$0x7] }
  0x66   :  { %1464 = vmatpush1.bf16.msra.mxu0 %v1463_v36  ;;  %1515 = vmatprep.subr.bf16.mxu1 %v1596_v56  ;;  %v225_v36 = vld [vmem:[#allocation2 + $0x590] sm:$0xff] }
  0x67   :  { %1466 = vmatprep.subr.bf16.mxu0 %v1465_v37  ;;  %v228_v37 = vld [vmem:[#allocation2 + $0x5a8] sm:$0xff]  ;;  %v1495_v39 = vpack.c.bf16 %v225_v36, %v223_v35 }
  0x68   :  { %v1497_v40 = vpack.c.bf16 %v230_v38, %v228_v37 }
  0x69   :  { %1517 = vmatpush3.bf16.msra.mxu1 %v1516_v10  ;;  %v1598_v10 = vmov 0.0  }
  0x6a   :  { %1468 = vmatpush1.bf16.msra.mxu0 %v1467_v45  ;;  %1518 = vmatprep.subr.bf16.mxu1 %v1596_v56  ;;  %v1499_v45 = vpack.c.bf16 %v229_v42, %v227_v41  ;;  %1223 = vst [vmem:[%s1832_s6] sm:$0xff] %v1598_v10  ;;  %1224 = vst [vmem:[%s1832_s6 + $0x8] sm:$0x3] %v1598_v10  ;;  %v1599_v41 = vmov 0  }
  0x6b   :  { %1470 = vmatprep.subr.bf16.mxu0 %v1469_v47  ;;  %v231_v47 = vld [vmem:[#allocation2 + $0x5c0] sm:$0xff]  ;;  %1314 = vmatprep.mubr.msk.f32.mxu1 %vm1597_vm0, %v1598_v10 }
  0x6c   :  { %v1503_v55 = vpack.c.bf16 %v233_v49, %v231_v47  ;;  %v828_v49 = vld [vmem:[%s1830_s4] sm:$0x7] }
  0x6d   :  { %1520 = vmatpush3.bf16.msra.mxu1 %v1519_v18 }
  0x6e   :  { %1472 = vmatpush1.bf16.msra.mxu0 %v1471_v60  ;;  %1521 = vmatprep.subr.bf16.mxu1 %v1596_v56  ;;  %v237_v60 = vld [vmem:[#allocation2 + $0x5f0] sm:$0xff] }
  0x6f   :  { %1474 = vmatprep.subr.bf16.mxu0 %v1473_v61  ;;  %v1507_v61 = vpack.c.bf16 %v237_v60, %v235_v58 }
  0x71   :  { %1523 = vmatpush3.bf16.msra.mxu1 %v1522_v1 }
  0x72   :  { %1476 = vmatpush1.bf16.msra.mxu0 %v1475_v5  ;;  %1524 = vmatprep.subr.bf16.mxu1 %v1596_v56  ;;  %v485_v5 = vld [vmem:[%s1828_s2 + $0x60] sm:$0xff] }
  0x73   :  { %1478 = vmatprep.subr.bf16.mxu0 %v1477_v6  ;;  %v486_v6 = vld [vmem:[%s1828_s2 + $0x68] sm:$0xff] }
  0x74   :  { %v1528_v7 = vpack.c.bf16 %v486_v6, %v485_v5 }
  0x75   :  { %1526 = vmatpush3.bf16.msra.mxu1 %v1525_v4 }
  0x76   :  { %1480 = vmatpush1.bf16.msra.mxu0 %v1479_v14  ;;  %1527 = vmatprep.subr.bf16.mxu1 %v1596_v56  ;;  %v1243_v14 = vld [vmem:[%s1831_s5] ss:$0 sm:$0xff] }
  0x77   :  { %1482 = vmatprep.subr.bf16.mxu0 %v1481_v15 }
  0x79   :  { %1529 = vmatpush3.bf16.msra.mxu1 %v1528_v7 }
  0x7a   :  { %1484 = vmatpush1.bf16.msra.mxu0 %v1483_v21  ;;  %1530 = vmatprep.subr.bf16.mxu1 %v1596_v56 }
  0x7b   :  { %1486 = vmatprep.subr.bf16.mxu0 %v1485_v22 }
  0x7d   :  { %1532 = vmatpush3.bf16.msra.mxu1 %v1531_v11 }
  0x7e   :  { %1488 = vmatpush1.bf16.msra.mxu0 %v1487_v27  ;;  %615 = vmatprep.subr.mxu1 %v1665_v54  ;;  %v1244_v54 = vld [vmem:[%s1831_s5 + $0x1] ss:$0 sm:$0xff] }
  0x7f   :  { %1490 = vmatprep.subr.bf16.mxu0 %v1489_v28 }
  0x82   :  { %1492 = vmatpush1.bf16.msra.mxu0 %v1491_v33 }
  0x83   :  { %1494 = vmatprep.subr.bf16.mxu0 %v1493_v34 }
  0x86   :  { %1496 = vmatpush1.bf16.msra.mxu0 %v1495_v39 }
  0x87   :  { %1498 = vmatprep.subr.bf16.mxu0 %v1497_v40  ;;  %v45_v40 = vld [vmem:[%s1831_s5 + $0x2] sm:$0x7] }
  0x88   :  { %1088 = vperm.xlu1 %1553, %v45_v40  }
  0x8a   :  { %1500 = vmatpush1.bf16.msra.mxu0 %v1499_v45 }
  0x8b   :  { %1502 = vmatprep.subr.bf16.mxu0 %v1501_v46 }
  0x8e   :  { %1504 = vmatpush1.bf16.msra.mxu0 %v1503_v55 }
  0x8f   :  { %1506 = vmatprep.subr.bf16.mxu0 %v1505_v57 }
  0x92   :  { %1508 = vmatpush1.bf16.msra.mxu0 %v1507_v61 }
  0x95   :  { %446 = vmatmul.mubr.f32.vlgmr.msra.gmra.mrb[0].mxu0 %v1713_v62 }
 0x107   :  { %v1089_v1 = vpop.permute.xlu1 %1088 }
 0x133   :  { %v305_v12 = vpop.f32.mrb[0].mxu1 }
 0x134   :  { %v307_v13 = vpop.f32.mrb[1].mxu1 }
 0x168   :  { %v447_v15 = vpop.f32.mrb[0].mxu0 }
 0x169   :  { %v1533_v16 = vadd.f32 %v447_v15, %v305_v12  ;;  %v449_v17 = vpop.f32.mrb[1].mxu0 }
 0x16a   :  { %v1756_v18 = vadd.f32 %v449_v17, %v307_v13 }
 0x16b   :  { %v456_v19 = vadd.f32 %v1533_v16, %v1243_v14 }
 0x16d   :  { %1555 = vtanh.f32 %v456_v19 }
 0x177   :  { %v1556_v20 = vpop.eup %1555 }
 0x178   :  { %1315 = vmatmul.mubr.f32.vlgmr.msra.gmra.mrb[2].mxu1 %v1556_v20 }
 0x179   :  { %616 = vmatpush1.msra.mxu1 %v1684_v52  ;;  %679 = vmatprep.mubr.f32.mxu1 %v1598_v10 }
 0x17a   :  { %686 = vmatprep.subr.mxu1 %v1654_v48 }
 0x24b   :  { %v555_v56 = vpop.f32.mrb[2].mxu1 }
 0x24c   :  { %v556_v21 = vadd.f32 %v1244_v54, %v555_v56  ;;  %v1316_v22 = vpop.f32.mrb[3].mxu1 }
 0x24d   :  { %v1199_v22 = vlaneseq }
 0x24e   :  { %v560_v23 = vsel %vm559_vm1, %v556_v21, -inf }
 0x24f   :  { %v561_v24 = vrot.slane %v560_v23, 4 }
 0x251   :  { %v562_v25 = vmax.f32 %v560_v23, %v561_v24  ;;  %v1200_v24 = vand.u32 127, %v1199_v22 }
 0x253   :  { %v563_v26 = vrot.slane %v562_v25, 2 }
 0x255   :  { %v564_v27 = vmax.f32 %v562_v25, %v563_v26  ;;  %v1202_v25 = vshrl.u32 %v1199_v22, 7 }
 0x257   :  { %v565_v28 = vrot.slane %v564_v27, 1 }
 0x259   :  { %v566_v52 = vmax.f32 %v564_v27, %v565_v28  ;;  %v1203_v27 = vsub.s32 %v1200_v24, %v1202_v25 }
 0x25b   :  { %v567_v29 = vsub.f32 %v556_v21, %v566_v52 }
 0x25d   :  { %v568_v30 = vmul.f32 1.442695, %v567_v29 }
 0x25f   :  { %1557 = vpow2.f32 %v568_v30 }
 0x269   :  { %v1558_v48 = vpop.eup %1557 }
 0x26a   :  { %v570_v31 = vsel %vm559_vm1, %v1558_v48, 0.0 }
 0x26b   :  { %v571_v32 = vrot.slane %v570_v31, 4 }
 0x26d   :  { %v572_v33 = vadd.f32 %v571_v32, %v570_v31 }
 0x26f   :  { %v573_v34 = vrot.slane %v572_v33, 2 }
 0x271   :  { %v574_v35 = vadd.f32 %v573_v34, %v572_v33 }
 0x273   :  { %v575_v36 = vrot.slane %v574_v35, 1 }
 0x275   :  { %v576_v37 = vadd.f32 %v575_v36, %v574_v35 }
 0x277   :  { %1559 = vrcp.f32 %v576_v37 }
 0x281   :  { %v1560_v38 = vpop.eup %1559 }
 0x282   :  { %v578_v39 = vmul.f32 %v1560_v38, %v1558_v48 }
 0x284   :  { %579 = vxpose.xlu0.b32.start.end [1/1] (short) (narrow) %v578_v39, 8  ;;  %1225 = vst.msk [vmem:[%s1832_s6] sm:$0xff] %vm559_vm1, %v578_v39 }
 0x2ad   :  { %1552 = vset.pattern.permute.xlu0 %v1599_v41 }
 0x2ae   :  { %1078 = vperm.xlu0 %1552, %v45_v40  }
 0x2b2   :  { %463 = vrot.lane.b32.xlu0 %v1244_v54, %s1600_s14 }
 0x2b3   :  { %1554 = vset.pattern.permute.xlu0 %v1601_v53 }
 0x304   :  { %v595_v42 = vpop.trf.xlu0 }
 0x305   :  { %1246 = vmatmul.mubr.msk.f32.vlgmr.msra.gmra.mrb[4].mxu1 %vm611_vm2, %v595_v42 }
 0x306   :  { %687 = vmatpush1.msra.mxu1 %v1660_v51  ;;  %750 = vmatprep.mubr.f32.mxu1 %v1598_v10  ;;  %v1249_v51 = vld [vmem:[%s1830_s4 + $0x4] sm:$0x7] }
 0x307   :  { %757 = vmatprep.subr.mxu1 %v1670_v59 }
 0x309   :  { %1247 = vmatmul.mubr.msk.f32.vlgmr.msra.gmra.mrb[6].mxu1 %vm611_vm2, %v595_v42 }
 0x30a   :  { %758 = vmatpush1.msra.mxu1 %v1713_v62  ;;  %821 = vmatprep.mubr.f32.mxu1 %v1598_v10 }
 0x30d   :  { %1248 = vmatmul.mubr.msk.f32.vlgmr.msra.gmra.mrb[8].mxu1 %vm611_vm2, %v595_v42 }
 0x30e   :  { %905 = vmatprep.mubr.f32.mxu1 %v1598_v10 }
 0x32d   :  { %v1079_v55 = vpop.permute.xlu0 %1078 }
 0x331   :  { %v464_v56 = vpop.permute.xlu0 %463 }
 0x332   :  { %v466_v21 = vadd.f32 %v1756_v18, %v464_v56  ;;  %v46_v18 = vld [vmem:[%s1831_s5 + $0x2] sm:$0x3] }
 0x334   :  { %v1245_v23 = vmul.f32 -1.442695, %v466_v21 }
 0x336   :  { %1561 = vpow2.f32 %v1245_v23 }
 0x340   :  { %v1562_v48 = vpop.eup %1561 }
 0x341   :  { %v470_v32 = vadd.f32 1.0, %v1562_v48 }
 0x343   :  { %1563 = vrcp.f32 %v470_v32 }
 0x34d   :  { %v1564_v33 = vpop.eup %1563 }
 0x3d8   :  { %v681_v43 = vpop.f32.mrb[4].mxu1 }
 0x3d9   :  { %v683_v44 = vpop.f32.mrb[5].mxu1 }
 0x3dc   :  { %v752_v45 = vpop.f32.mrb[6].mxu1 }
 0x3dd   :  { %v754_v46 = vpop.f32.mrb[7].mxu1 }
 0x3de   :  { %1250 = vmatprep.subr.msk.mxu1 %vm834_vm3, %v754_v46 }
 0x3df   :  { %1251 = vmatpush1.msk.msra.mxu1 %vm834_vm3, %v752_v45 }
 0x3e0   :  { %v823_v59 = vpop.f32.mrb[8].mxu1  ;;  %1252 = vmatmul.mubr.msk.f32.vlgmr.msra.gmra.mrb[10].mxu1 %vm559_vm1, %v1249_v51  ;;  %1253 = vmatprep.subr.msk.mxu1 %vm834_vm3, %v683_v44 }
 0x3e1   :  { %v825_v47 = vpop.f32.mrb[9].mxu1  ;;  %1254 = vmatpush1.msk.msra.mxu1 %vm834_vm3, %v681_v43  ;;  %985 = vmatprep.mubr.f32.mxu1 %v1598_v10 }
 0x3e2   :  { %1257 = vmatprep.subr.msk.mxu1 %vm834_vm3, %v825_v47 }
 0x3e8   :  { %1255 = vmatmul.mubr.msk.f32.vlgmr.msra.gmra.mrb[10].mxu1 %vm559_vm1, %v828_v49 }
 0x3e9   :  { %1258 = vmatpush1.msk.msra.mxu1 %vm834_vm3, %v823_v59  ;;  %1067 = vmatprep.mubr.f32.mxu1 %v1598_v10 }
 0x3f0   :  { %1259 = vmatmul.mubr.msk.f32.vlgmr.msra.gmra.mrb[10].mxu1 %vm559_vm1, %v1256_v50 }
 0x3f1   :  { %1164 = vmatprep.mubr.f32.mxu1 %v1598_v10 }
 0x4c3   :  { %v1069_v57 = vpop.f32.mrb[10].mxu1 }
 0x4c4   :  { %v1081_v58 = vadd.f32 %v1079_v55, %v1069_v57  ;;  %v1071_v60 = vpop.f32.mrb[11].mxu1 }
 0x4c5   :  { %v1082_v61 = vadd.f32 %v1079_v55, %v1071_v60 }
 0x4c6   :  { %v1083_v63 = vmax.f32 %v1081_v58, 0.0 }
 0x4c7   :  { %v1084_v62 = vmax.f32 %v1082_v61, 0.0 }
 0x4c9   :  { %1261 = vmatprep.subr.msk.mxu1 %vm834_vm3, %v1084_v62 }
 0x4ca   :  { %1262 = vmatpush1.msk.msra.mxu1 %vm834_vm3, %v1083_v63 }
 0x4cb   :  { %1263 = vmatmul.mubr.msk.f32.vlgmr.msra.gmra.mrb[12].mxu1 %vm559_vm1, %v1260_v0 }
 0x59e   :  { %v1166_v2 = vpop.f32.mrb[12].mxu1 }
 0x59f   :  { %v1167_v3 = vadd.f32 %v1166_v2, %v1089_v1  ;;  %v1168_v4 = vpop.f32.mrb[13].mxu1 }
 0x5a0   :  { %v1169_v5 = vadd.f32 %v1168_v4, %v1089_v1 }
 0x5a1   :  { %v1171_v6 = vmax.f32 %v1167_v3, 0.0 }
 0x5a2   :  { %v1172_v7 = vmax.f32 %v1169_v5, 0.0 }
 0x5a4   :  { %v1177_v10 = vcombine.low %v1171_v6, %v1172_v7 }
 0x5a6   :  { %v1179_v11 = vmul.f32 %v1177_v10, %v1173_v8  ;;  %v1180_v12 = vmul.f32 %v1177_v10, %v1174_v9 }
 0x5a8   :  { %v1183_v13 = vcombine.high %v1179_v11, %v1179_v11  ;;  %v1184_v14 = vcombine.high %v1180_v12, %v1180_v12  ;;  %v1187_v15 = vsel %vm834_vm3, %v1179_v11, 0.0  ;;  %v1192_v20 = vsel %vm834_vm3, %v1180_v12, 0.0 }
 0x5aa   :  { %v1188_v16 = vsel %vm834_vm3, %v1183_v13, 0.0  ;;  %v1193_v19 = vsel %vm834_vm3, %v1184_v14, 0.0 }
 0x5ab   :  { %v1189_v17 = vadd.f32 %v1188_v16, %v1187_v15  ;;  %v1194_v54 = vadd.f32 %v1193_v19, %v1192_v20 }
 0x5ad   :  { %1190 = vadd.xlane.f32.xlu1 %v1189_v17 }
 0x5b1   :  { %1195 = vadd.xlane.f32.xlu1 %v1194_v54 }
 0x63a   :  { %v1191_v26 = vpop.xlane.xlu1 %1190 }
 0x63b   :  { %v1204_v52 = vrot.slane %v1191_v26, %v1203_v27 }
 0x63e   :  { %v1196_v28 = vpop.xlane.xlu1 %1195 }
 0x63f   :  { %v1208_v29 = vrot.slane %v1196_v28, %v1203_v27 }
 0x641   :  { %v1210_v30 = vsel %vm1209_vm4, %v1208_v29, %v1204_v52 }
 0x642   :  { %v1213_v31 = vsel %vm1212_vm5, %v1210_v30, 0.0 }
 0x643   :  { %1214 = vadd.xlane.f32.xlu1 %v1213_v31 }
 0x654   :  { %1227 = vrot.lane.b32.xlu1 %v1564_v33, %s1602_s3 }
 0x6d0   :  { %v1215_v34 = vpop.xlane.xlu1 %1214 }
 0x6d1   :  { %v1216_v35 = vadd.f32 %v1215_v34, %v46_v18 }
 0x6d3   :  { %v1264_v36 = vmul.f32 -1.442695, %v1216_v35 }
 0x6d4   :  { %v1228_v37 = vpop.permute.xlu1 %1227 }
 0x6d5   :  { %1565 = vpow2.f32 %v1264_v36  ;;  %1231 = vst.msk [vmem:[%s1832_s6] sm:$0xff] %vm1230_vm6, %v1228_v37 }
 0x6df   :  { %v1566_v38 = vpop.eup %1565 }
 0x6e0   :  { %v1220_v39 = vadd.f32 1.0, %v1566_v38 }
 0x6e2   :  { %1567 = vrcp.f32 %v1220_v39 }
 0x6ec   :  { %v1568_v40 = vpop.eup %1567 }
 0x6ed   :  { %1233 = vrot.lane.b32.xlu0 %v1568_v40, %s1603_s29 }
 0x75f   :  { %v1234_v41 = vpop.permute.xlu0 %1233 }
 0x760   :  { %1237 = vst.msk [vmem:[%s1832_s6 + $0x8] sm:$0x3] %vm1236_vm7, %v1234_v41 }
 0x761   :  { %1242 = vsyncpa [#allocation3], 1 }

</bundles_post_ra>
